<compile_context>
chip_gen: v7x
topology: tpu7x:2x2x1
jax: 0.10.0
libtpu: 0.0.40
codegen_flags: <defaults>
</compile_context>

<pallas_src>
import functools

import jax
import jax.numpy as jnp
from jax import lax
from jax.experimental import pallas as pl
from jax.experimental.pallas import tpu as pltpu


def _round_up(x, m):
    return ((x + m - 1) // m) * m


def _pick_tile(dim, cap, gran):
    """Largest tile <= cap that evenly divides dim (dim is a multiple of gran)."""
    if dim <= cap:
        return dim
    t = (cap // gran) * gran
    while dim % t != 0:
        t -= gran
    return t


def _batch_tile(B_p, max_blocks):
    """Split B_p into <= max_blocks sublane-aligned blocks (for megacore)."""
    for nb in range(min(max_blocks, B_p // 8), 1, -1):
        if B_p % nb == 0 and (B_p // nb) % 8 == 0:
            return B_p // nb
    return B_p


def _vmem_limit(nbytes):
    """Explicit scoped-VMEM request: computed need + headroom, clamped to
    [32 MiB, 128 MiB] so larger-than-default tiles compile on every generation
    (v5e default is only 16 MiB); v7x-sized configs stay well under 64 MiB."""
    return int(min(max(nbytes * 5 // 4 + (4 << 20), 32 << 20), 128 << 20))


# ---------------------------------------------------------------------------
# Tiled matmul + bias:  out = x @ w + b
# Two variants: single-K-tile (common case now that tk_cap=2048 covers E_p/H_p)
# and K-accumulating (only when K > tk_cap).
# ---------------------------------------------------------------------------
def _matmul_bias_kernel_nk(x_ref, w_ref, b_ref, o_ref):
    o_ref[...] = (jnp.dot(x_ref[...], w_ref[...],
                          preferred_element_type=jnp.float32)
                  + b_ref[...]).astype(o_ref.dtype)


def _matmul_bias_kernel_acc(x_ref, w_ref, b_ref, o_ref, acc_ref):
    @pl.when(pl.program_id(2) == 0)
    def _():
        acc_ref[...] = jnp.zeros_like(acc_ref)

    acc_ref[...] += jnp.dot(x_ref[...], w_ref[...],
                            preferred_element_type=jnp.float32)

    @pl.when(pl.program_id(2) == pl.num_programs(2) - 1)
    def _():
        o_ref[...] = (acc_ref[...] + b_ref[...]).astype(o_ref.dtype)


def matmul_bias(x, w, b, *, out_dtype, tm_cap=512, tn_cap=1024, tk_cap=2048):
    """x: (M, K), w: (K, N), b: (1, N) f32  ->  (M, N) out_dtype.
    M is padded up to a tile multiple internally; N, K must be multiples of 128."""
    M, K = x.shape
    K2, N = w.shape
    assert K == K2 and b.shape == (1, N)

    tm = tm_cap if M > tm_cap else _round_up(M, 8)
    M_p = _round_up(M, tm)
    if M_p != M:
        x = jnp.pad(x, ((0, M_p - M), (0, 0)))
    tn = _pick_tile(N, tn_cap, 128)
    tk = _pick_tile(K, tk_cap, 128)

    xb = jnp.dtype(x.dtype).itemsize
    wb = jnp.dtype(w.dtype).itemsize
    ob = jnp.dtype(out_dtype).itemsize

    if tk == K:
        # K fits one tile: no accumulator, no K grid axis.
        need = 2 * (tm * K * xb + K * tn * wb + 8 * tn * 4 + tm * tn * ob)
        out = pl.pallas_call(
            _matmul_bias_kernel_nk,
            out_shape=jax.ShapeDtypeStruct((M_p, N), out_dtype),
            grid_spec=pltpu.PrefetchScalarGridSpec(
                num_scalar_prefetch=0,
                grid=(M_p // tm, N // tn),
                in_specs=[
                    pl.BlockSpec((tm, K), lambda i, j: (i, 0)),
                    pl.BlockSpec((K, tn), lambda i, j: (0, j)),
                    pl.BlockSpec((1, tn), lambda i, j: (0, j)),
                ],
                out_specs=pl.BlockSpec((tm, tn), lambda i, j: (i, j)),
            ),
            compiler_params=pltpu.CompilerParams(
                dimension_semantics=("parallel", "parallel"),
                vmem_limit_bytes=_vmem_limit(need)),
        )(x, w, b)
    else:
        need = (2 * (tm * tk * xb + tk * tn * wb + 8 * tn * 4 + tm * tn * ob)
                + tm * tn * 4)
        out = pl.pallas_call(
            _matmul_bias_kernel_acc,
            out_shape=jax.ShapeDtypeStruct((M_p, N), out_dtype),
            grid_spec=pltpu.PrefetchScalarGridSpec(
                num_scalar_prefetch=0,
                grid=(M_p // tm, N // tn, K // tk),
                in_specs=[
                    pl.BlockSpec((tm, tk), lambda i, j, k: (i, k)),
                    pl.BlockSpec((tk, tn), lambda i, j, k: (k, j)),
                    pl.BlockSpec((1, tn), lambda i, j, k: (0, j)),
                ],
                out_specs=pl.BlockSpec((tm, tn), lambda i, j, k: (i, j)),
                scratch_shapes=[pltpu.VMEM((tm, tn), jnp.float32)],
            ),
            compiler_params=pltpu.CompilerParams(
                dimension_semantics=("parallel", "parallel", "arbitrary"),
                vmem_limit_bytes=_vmem_limit(need)),
        )(x, w, b)
    return out if M_p == M else out[:M]


# ---------------------------------------------------------------------------
# LSTM recurrence kernel.
# Grid = (batch_blocks, time_chunks): batch blocks are independent ("parallel",
# feeds both v7x TensorCores), the time axis is the serial recurrence
# ("arbitrary").  Only the small h @ W_hh matmul is on the serial path; the
# input projection (incl. bias) is precomputed.  h/c carried in VMEM scratch
# (re-initialized at chunk 0 of every batch block); final state written only
# on the last chunk, indexed by the batch-block axis.
# ---------------------------------------------------------------------------
def _lstm_chunk_kernel(xp_ref, whh_ref, h0_ref, c0_ref,
                       out_ref, hT_ref, cT_ref,
                       h_sc, c_sc, *, hidden, tc, seq_len, group):
    t = pl.program_id(1)

    @pl.when(t == 0)
    def _():
        h_sc[...] = h0_ref[...]
        c_sc[...] = c0_ref[...]

    H = hidden
    need_mask = (seq_len % tc) != 0           # static: only if T was padded

    def one_step(i, h, c):
        # Recurrent matmul only; bf16 xp (incl. bias) promotes to f32 in the add.
        gates = (jnp.dot(h.astype(jnp.bfloat16), whh_ref[...],
                         preferred_element_type=jnp.float32)
                 + xp_ref[i])                                      # (tb, 4H) f32
        i_g = jax.nn.sigmoid(gates[:, 0 * H:1 * H])
        f_g = jax.nn.sigmoid(gates[:, 1 * H:2 * H])
        g_g = jnp.tanh(gates[:, 2 * H:3 * H])
        o_g = jax.nn.sigmoid(gates[:, 3 * H:4 * H])
        c_new = f_g * c + i_g * g_g
        h_new = o_g * jnp.tanh(c_new)
        if need_mask:                         # freeze state on padded timesteps
            valid = (t * tc + i) < seq_len
            h_new = jnp.where(valid, h_new, h)
            c_new = jnp.where(valid, c_new, c)
        out_ref[i] = h_new.astype(out_ref.dtype)
        return h_new, c_new

    # Grouped unroll: python-unrolled groups inside a non-unrolled fori_loop,
    # so large time chunks don't blow the vreg budget.
    def group_body(g, carry):
        h, c = carry
        for j in range(group):
            h, c = one_step(g * group + j, h, c)
        return h, c

    n_groups = tc // group
    if n_groups == 1:
        h_fin, c_fin = group_body(0, (h_sc[...], c_sc[...]))
    else:
        h_fin, c_fin = lax.fori_loop(0, n_groups, group_body,
                                     (h_sc[...], c_sc[...]))
    h_sc[...] = h_fin
    c_sc[...] = c_fin

    @pl.when(t == pl.num_programs(1) - 1)
    def _():
        hT_ref[...] = h_fin
        cT_ref[...] = c_fin


def lstm_layer(x_proj, whh_t, h0, c0, *, tc, seq_len, batch_blocks=2,
               unroll_group=8):
    """x_proj: (T_p, B_p, 4*H_p) bf16 precomputed x @ W_ih^T + b (gate order i,f,g,o).
    whh_t: (H_p, 4*H_p) bf16.  h0, c0: (B_p, H_p) f32.
    Returns (out (T_p,B_p,H_p) bf16, hT (B_p,H_p) f32, cT (B_p,H_p) f32)."""
    T_p, B_p, G = x_proj.shape
    H_p = whh_t.shape[0]
    assert G == 4 * H_p and T_p % tc == 0

    tb = _batch_tile(B_p, batch_blocks)
    nb, nt = B_p // tb, T_p // tc

    group = min(tc, unroll_group)
    while tc % group:
        group -= 1

    kernel = functools.partial(_lstm_chunk_kernel, hidden=H_p, tc=tc,
                               seq_len=seq_len, group=group)
    out_shape = (jax.ShapeDtypeStruct((T_p, B_p, H_p), jnp.bfloat16),
                 jax.ShapeDtypeStruct((B_p, H_p), jnp.float32),
                 jax.ShapeDtypeStruct((B_p, H_p), jnp.float32))

    def call(single_buffer):
        if single_buffer:
            # Grid-invariant weight + per-batch-block initial state: one VMEM
            # buffer is enough (block index never changes along the serial time
            # axis) -> halves the largest allocation for the v7x 64 MiB budget.
            whh_spec = pl.BlockSpec((H_p, G), lambda b, t: (0, 0),
                                    pipeline_mode=pl.Buffered(1))
            h0_spec = pl.BlockSpec((tb, H_p), lambda b, t: (b, 0),
                                   pipeline_mode=pl.Buffered(1))
            c0_spec = pl.BlockSpec((tb, H_p), lambda b, t: (b, 0),
                                   pipeline_mode=pl.Buffered(1))
            w_bufs = st_bufs = 1
        else:
            whh_spec = pl.BlockSpec((H_p, G), lambda b, t: (0, 0))
            h0_spec = pl.BlockSpec((tb, H_p), lambda b, t: (b, 0))
            c0_spec = pl.BlockSpec((tb, H_p), lambda b, t: (b, 0))
            w_bufs = st_bufs = 2

        need = (2 * tc * tb * G * 2              # xp chunks (bf16), double-buffered
                + w_bufs * H_p * G * 2           # W_hh (bf16)
                + st_bufs * 2 * tb * H_p * 4     # h0, c0 (f32)
                + 2 * tc * tb * H_p * 2          # out chunks (bf16)
                + 2 * 2 * tb * H_p * 4           # hT, cT outputs (f32)
                + 2 * tb * H_p * 4)              # h/c carry scratch (f32)

        return pl.pallas_call(
            kernel,
            out_shape=out_shape,
            grid_spec=pltpu.PrefetchScalarGridSpec(
                num_scalar_prefetch=0,
                grid=(nb, nt),
                in_specs=[
                    pl.BlockSpec((tc, tb, G), lambda b, t: (t, b, 0)),
                    whh_spec, h0_spec, c0_spec,
                ],
                out_specs=(
                    pl.BlockSpec((tc, tb, H_p), lambda b, t: (t, b, 0)),
                    pl.BlockSpec((tb, H_p), lambda b, t: (b, 0)),
                    pl.BlockSpec((tb, H_p), lambda b, t: (b, 0)),
                ),
                scratch_shapes=[pltpu.VMEM((tb, H_p), jnp.float32),
                                pltpu.VMEM((tb, H_p), jnp.float32)],
            ),
            compiler_params=pltpu.CompilerParams(
                dimension_semantics=("parallel", "arbitrary"),
                vmem_limit_bytes=_vmem_limit(need)),
        )(x_proj, whh_t, h0, c0)

    try:
        return call(True)
    except Exception:
        # pl.Buffered(1) not supported by this jax version: fall back to default
        # double-buffering (costs one extra W_hh copy of VMEM; semantics identical).
        return call(False)


# ---------------------------------------------------------------------------
# Seq2SeqDecoder: parameters + forward (matches nn.Embedding / nn.LSTM / nn.Linear)
# ---------------------------------------------------------------------------
class Seq2SeqDecoder:
    def __init__(self, vocab_size, embed_size, num_hiddens, num_layers,
                 dropout=0.0, key=None, time_chunk=16, batch_blocks=2,
                 logits_dtype=jnp.float32):
        self.vocab_size = vocab_size
        self.embed_size = embed_size
        self.num_hiddens = num_hiddens
        self.num_layers = num_layers
        self.tc = time_chunk
        self.batch_blocks = batch_blocks          # set 1 on single-TC parts if MXU-bound
        self.logits_dtype = logits_dtype          # bf16 halves logits HBM writeback

        # Lane/sublane-dense padded sizes.  Large vocabs are additionally padded
        # to a multiple of the 1024-wide N tile so the dense GEMM never degrades
        # toward 128-wide tiles for awkward vocab sizes.
        self.E_p = _round_up(embed_size, 128)
        self.H_p = _round_up(num_hiddens, 128)
        V_p = _round_up(vocab_size, 128)
        if V_p > 1024:
            V_p = _round_up(V_p, 1024)
        self.V_p = V_p

        key = jax.random.PRNGKey(42) if key is None else key
        keys = jax.random.split(key, 3 + 4 * num_layers)
        scale = 0.1

        V, E, H = vocab_size, embed_size, num_hiddens
        E_p, H_p = self.E_p, self.H_p

        # ---- Raw (PyTorch-layout) f32 parameters (kept for the reference check) ----
        self.embedding = scale * jax.random.normal(keys[0], (V, E), jnp.float32)
        w_dense = scale * jax.random.normal(keys[1], (V, H), jnp.float32)
        b_dense = scale * jax.random.normal(keys[2], (V,), jnp.float32)
        self.raw_layers = []
        for layer in range(num_layers):
            in_size = E if layer == 0 else H
            k0, k1, k2, k3 = keys[3 + 4 * layer: 3 + 4 * layer + 4]
            w_ih = scale * jax.random.normal(k0, (4 * H, in_size), jnp.float32)
            w_hh = scale * jax.random.normal(k1, (4 * H, H), jnp.float32)
            b_ih = scale * jax.random.normal(k2, (4 * H,), jnp.float32)
            b_hh = scale * jax.random.normal(k3, (4 * H,), jnp.float32)
            self.raw_layers.append((w_ih, w_hh, b_ih, b_hh))
        self.raw_dense = (w_dense, b_dense)

        # ---- Padded / transposed / bf16 kernel parameters ----
        self.embedding_p = (jnp.zeros((V, E_p), jnp.float32)
                            .at[:, :E].set(self.embedding))

        # LSTM layers: gate order (i, f, g, o); each gate block padded to H_p so
        # gate slices in the kernel are full-lane (multiples of 128).
        self.wih_t, self.whh_t, self.bias = [], [], []
        for layer in range(num_layers):
            in_size = E if layer == 0 else H
            in_p = E_p if layer == 0 else H_p
            w_ih, w_hh, b_ih, b_hh = self.raw_layers[layer]
            wih_t_p = jnp.zeros((in_p, 4 * H_p), jnp.float32)
            whh_t_p = jnp.zeros((H_p, 4 * H_p), jnp.float32)
            bias_p = jnp.zeros((1, 4 * H_p), jnp.float32)
            b_sum = b_ih + b_hh
            for g in range(4):
                wih_t_p = wih_t_p.at[:in_size, g * H_p:g * H_p + H].set(
                    w_ih[g * H:(g + 1) * H, :].T)
                whh_t_p = whh_t_p.at[:H, g * H_p:g * H_p + H].set(
                    w_hh[g * H:(g + 1) * H, :].T)
                bias_p = bias_p.at[0, g * H_p:g * H_p + H].set(
                    b_sum[g * H:(g + 1) * H])
            self.wih_t.append(wih_t_p.astype(jnp.bfloat16))
            self.whh_t.append(whh_t_p.astype(jnp.bfloat16))
            self.bias.append(bias_p)            # f32, added in the f32 accumulator

        # Dense (hidden -> vocab), padded + transposed; bf16 weight / f32 bias.
        w_dense_t_p = (jnp.zeros((H_p, self.V_p), jnp.float32)
                       .at[:H, :V].set(w_dense.T))
        self.w_dense_t = w_dense_t_p.astype(jnp.bfloat16)
        self.b_dense = jnp.zeros((1, self.V_p), jnp.float32).at[0, :V].set(b_dense)

    def init_state(self, enc_outputs, *args):
        # enc_outputs = (enc_out, (h, c)); state is the encoder final (h, c)
        return enc_outputs[1]

    def forward(self, X, state):
        """X: (batch, seq_len) int32 token ids.
        state: (h, c), each (num_layers, batch, num_hiddens) f32."""
        h0, c0 = state
        B, T = X.shape
        L, H = self.num_layers, self.num_hiddens
        H_p, E_p, V_p = self.H_p, self.E_p, self.V_p
        B_p = _round_up(B, 8)
        tc = min(self.tc, _round_up(T, 8))
        T_p = _round_up(T, tc)

        # Embedding gather (glue) + padding -> time-major bf16 (T_p, B_p, E_p).
        emb = jnp.take(self.embedding_p, X, axis=0)                   # (B, T, E_p)
        emb = jnp.pad(emb, ((0, B_p - B), (0, T_p - T), (0, 0)))
        x_tbe = jnp.transpose(emb, (1, 0, 2)).astype(jnp.bfloat16)    # (T_p, B_p, E_p)

        h0_p = jnp.pad(h0, ((0, 0), (0, B_p - B), (0, H_p - H)))
        c0_p = jnp.pad(c0, ((0, 0), (0, B_p - B), (0, H_p - H)))

        layer_in_2d = x_tbe.reshape(T_p * B_p, E_p)
        new_h, new_c = [], []
        out_tbh = None
        for layer in range(L):
            # Hoisted input projection: one big MXU GEMM over all timesteps.
            xp2d = matmul_bias(layer_in_2d, self.wih_t[layer], self.bias[layer],
                               out_dtype=jnp.bfloat16)                # (T_p*B_p, 4H_p)
            xp = xp2d.reshape(T_p, B_p, 4 * H_p)
            out_tbh, hT, cT = lstm_layer(xp, self.whh_t[layer],
                                         h0_p[layer], c0_p[layer],
                                         tc=tc, seq_len=T,
                                         batch_blocks=self.batch_blocks)
            new_h.append(hT[:B, :H])
            new_c.append(cT[:B, :H])
            layer_in_2d = out_tbh.reshape(T_p * B_p, H_p)

        # Dense projection producing logits directly in (B, T, V) layout:
        # transpose only the (much smaller) hidden activations, never the logits.
        x_bth = jnp.transpose(out_tbh, (1, 0, 2)).reshape(B_p * T_p, H_p)
        logits2d = matmul_bias(x_bth, self.w_dense_t, self.b_dense,
                               out_dtype=self.logits_dtype)           # (B_p*T_p, V_p)
        logits = logits2d.reshape(B_p, T_p, V_p)
        if (B_p, T_p, V_p) != (B, T, self.vocab_size):
            logits = logits[:B, :T, :self.vocab_size]

        return logits, (jnp.stack(new_h, axis=0), jnp.stack(new_c, axis=0))


# ---------------------------------------------------------------------------
# Pure-JAX f32 reference (matches PyTorch nn.LSTM semantics) for validation.
# ---------------------------------------------------------------------------
def reference_forward(decoder, X, h0, c0):
    emb = jnp.take(decoder.embedding, X, axis=0)        # (B, T, E)
    x = jnp.transpose(emb, (1, 0, 2))                    # (T, B, E)
    B, T = X.shape
    H = decoder.num_hiddens
    hs = [h0[l] for l in range(decoder.num_layers)]
    cs = [c0[l] for l in range(decoder.num_layers)]
    outs = []
    for t in range(T):
        inp = x[t]
        for l, (w_ih, w_hh, b_ih, b_hh) in enumerate(decoder.raw_layers):
            gates = inp @ w_ih.T + hs[l] @ w_hh.T + b_ih + b_hh
            i_g = jax.nn.sigmoid(gates[:, 0 * H:1 * H])
            f_g = jax.nn.sigmoid(gates[:, 1 * H:2 * H])
            g_g = jnp.tanh(gates[:, 2 * H:3 * H])
            o_g = jax.nn.sigmoid(gates[:, 3 * H:4 * H])
            cs[l] = f_g * cs[l] + i_g * g_g
            hs[l] = o_g * jnp.tanh(cs[l])
            inp = hs[l]
        outs.append(inp)
    out = jnp.stack(outs, axis=0)                        # (T, B, H)
    w_dense, b_dense = decoder.raw_dense
    logits = out @ w_dense.T + b_dense                   # (T, B, V)
    return (jnp.transpose(logits, (1, 0, 2)),
            jnp.stack(hs, axis=0), jnp.stack(cs, axis=0))


if __name__ == "__main__":
    # Small shapes consistent with the module's forward.
    vocab_size = 32
    embed_size = 16
    num_hiddens = 32
    num_layers = 2
    batch = 2
    seq_len = 8

    root = jax.random.PRNGKey(0)
    k_tok, k_h, k_c, k_param = jax.random.split(root, 4)

    X = jax.random.randint(k_tok, (batch, seq_len), 0, vocab_size, dtype=jnp.int32)
    # Deterministic "encoder final state" stand-in: (h, c), each (L, B, H).
    h0 = 0.1 * jax.random.normal(k_h, (num_layers, batch, num_hiddens), jnp.float32)
    c0 = 0.1 * jax.random.normal(k_c, (num_layers, batch, num_hiddens), jnp.float32)

    decoder = Seq2SeqDecoder(vocab_size, embed_size, num_hiddens, num_layers,
                             dropout=0.0, key=k_param)

    out, (h_n, c_n) = decoder.forward(X, (h0, c0))
    jax.block_until_ready(out)
    jax.block_until_ready(h_n)
    jax.block_until_ready(c_n)

    assert out.shape == (batch, seq_len, vocab_size)
    assert h_n.shape == (num_layers, batch, num_hiddens)
    assert c_n.shape == (num_layers, batch, num_hiddens)
    assert bool(jnp.isfinite(out.astype(jnp.float32)).all())

    # Loose-tolerance check against a pure-JAX f32 reference (kernel uses bf16
    # weights/activations with f32 accumulation).
    ref_out, ref_h, ref_c = reference_forward(decoder, X, h0, c0)
    assert bool(jnp.allclose(out.astype(jnp.float32), ref_out, atol=2e-2, rtol=2e-2))
    assert bool(jnp.allclose(h_n, ref_h, atol=2e-2, rtol=2e-2))
    assert bool(jnp.allclose(c_n, ref_c, atol=2e-2, rtol=2e-2))

    print("KERNEL_OK")
</pallas_src>

<mosaic_0001>
module attributes {stable_mosaic.version = 11 : i64} {
  func.func @_matmul_bias_kernel_nk(%arg0: i32, %arg1: i32, %arg2: memref<64x128xbf16, #tpu.memory_space<vmem>>, %arg3: memref<128x512xbf16, #tpu.memory_space<vmem>>, %arg4: memref<1x512xf32, #tpu.memory_space<vmem>>, %arg5: memref<64x512xbf16, #tpu.memory_space<vmem>>) attributes {dimension_semantics = [#tpu.dimension_semantics<parallel>, #tpu.dimension_semantics<parallel>], iteration_bounds = array<i64: 1, 1>, scalar_prefetch = 0 : i64, scratch_operands = 0 : i64, tpu.core_type = #tpu.core_type<tc>, window_params = [{transform_indices = @transform_0, window_bounds = array<i64: 64, 128>}, {transform_indices = @transform_1, window_bounds = array<i64: 128, 512>}, {transform_indices = @transform_2, window_bounds = array<i64: 1, 512>}, {transform_indices = @transform_3, window_bounds = array<i64: 64, 512>}]} {
    %c0 = arith.constant 0 : index
    %c0_0 = arith.constant 0 : index
    %0 = vector.load %arg2[%c0, %c0_0] : memref<64x128xbf16, #tpu.memory_space<vmem>>, vector<64x128xbf16>
    %c0_1 = arith.constant 0 : index
    %c0_2 = arith.constant 0 : index
    %1 = vector.load %arg3[%c0_1, %c0_2] : memref<128x512xbf16, #tpu.memory_space<vmem>>, vector<128x512xbf16>
    %cst = arith.constant dense<0.000000e+00> : vector<64x512xf32>
    %2 = tpu.matmul %0, %1, %cst {dimension_numbers = #tpu.dot_dimension_numbers<[1], [0], [0], [1], [0, 0, 1, 1], [], []>} : vector<64x128xbf16>, vector<128x512xbf16>, vector<64x512xf32> -> vector<64x512xf32>
    %c0_3 = arith.constant 0 : index
    %c0_4 = arith.constant 0 : index
    %3 = vector.load %arg4[%c0_3, %c0_4] : memref<1x512xf32, #tpu.memory_space<vmem>>, vector<1x512xf32>
    %4 = vector.broadcast %3 : vector<1x512xf32> to vector<64x512xf32>
    %5 = arith.addf %2, %4 : vector<64x512xf32>
    %6 = arith.truncf %5 : vector<64x512xf32> to vector<64x512xbf16>
    %c0_5 = arith.constant 0 : index
    %c0_6 = arith.constant 0 : index
    %7 = vector.load %arg5[%c0_5, %c0_6] : memref<64x512xbf16, #tpu.memory_space<vmem>>, vector<64x512xbf16>
    tpu.vector_store %arg5[%c0_5, %c0_6], %6 {strides = array<i32>} : memref<64x512xbf16, #tpu.memory_space<vmem>>, vector<64x512xbf16>,
    return
  }
  func.func @transform_0(%arg0: i32, %arg1: i32) -> (i32, i32) {
    %c0_i32 = arith.constant 0 : i32
    %c0_i32_0 = arith.constant 0 : i32
    return %arg0, %c0_i32 : i32, i32
  }
  func.func @transform_1(%arg0: i32, %arg1: i32) -> (i32, i32) {
    %c0_i32 = arith.constant 0 : i32
    %c0_i32_0 = arith.constant 0 : i32
    return %c0_i32, %arg1 : i32, i32
  }
  func.func @transform_2(%arg0: i32, %arg1: i32) -> (i32, i32) {
    %c0_i32 = arith.constant 0 : i32
    %c0_i32_0 = arith.constant 0 : i32
    return %c0_i32, %arg1 : i32, i32
  }
  func.func @transform_3(%arg0: i32, %arg1: i32) -> (i32, i32) {
    %c0_i32 = arith.constant 0 : i32
    return %arg0, %arg1 : i32, i32
  }
}

</mosaic_0001>

<bundles_post_ra>
// kernel: tpu_custom_call.1
= control target key start
LH: loop header
LB: loop body
LE: loop exit
PB: predicated region body
PF: predicated region fallthrough
CT: control target
= control target key end

     0   :  { %8 = vsyncpa [#allocation3], 0  ;;  %s887_s0 = inlined_call_operand.hbm [shape: bf16[64,128], index: 0, kind: input, shape index: {}]   ;;  %s888_s1 = inlined_call_operand.hbm [shape: bf16[128,512], index: 1, kind: input, shape index: {}]   ;;  %s889_s2 = inlined_call_operand.vmem [shape: f32[1,512], index: 2, kind: input, shape index: {}]   ;;  %s890_s3 = inlined_call_operand.hbm [shape: bf16[64,512], index: 3, kind: output, shape index: {}]  }
   0x1   :  { %9 = vsyncpa [#allocation6], 0 }
   0x2   :  { %10 = vsyncpa [#allocation4], 0  ;;  %s766_s12 = smov [#allocation2]   ;;  %s694_s16 = scalar_lea.hbm %s887_s0, 512 }
   0x3   :  { %s16_s13 = sshll.u32 %s766_s12, 4  ;;  %p695_p0 = scmp.ne.s32.totalorder %s887_s0, %s694_s16  ;;  %s17_s13 = int_to_ptr.vmem [resolvable:$true] %s16_s13 }
   0x4   :  { %p698_p1 = scmp.lt.u32.totalorder %s694_s16, %s887_s0 }
   0x6   :  { %p700_p2 = pnand %p698_p1, %p695_p0 }
   0x8   :  { %703 = shalt.err (!%p700_p2)
}
   0x9   :  { %s704_s21 = scalar_lea.vmem %s17_s13, 512  ;;  %p709_p4 = scmp.lt.s32.totalorder %s17_s13, %s17_s13 }
   0xa   :  { %p705_p3 = scmp.ne.s32.totalorder %s17_s13, %s704_s21  ;;  %p710_p5 = scmp.lt.s32.totalorder %s704_s21, %s704_s21 }
   0xc   :  { %p711_p6 = por %p710_p5, %p709_p4 }
   0xe   :  { %p712_p7 = pnand %p711_p6, %p705_p3 }
  0x10   :  { %715 = shalt.err (!%p712_p7)
}
  0x11   :  { %s767_s22 = smov 64   ;;  %s768_s23 = smov 4  }
  0x12   :  { %22 = dma.hbm_to_vmem [thread:$0]  %s887_s0, 512, %s17_s13, [#allocation3], %s767_s22, %s767_s22, %s768_s23  }
  0x13   :  { %s769_s26 = smov [#allocation5]   ;;  %s716_s30 = scalar_lea.hbm %s888_s1, 4096 }
  0x14   :  { %s28_s27 = sshll.u32 %s769_s26, 4  ;;  %p717_p8 = scmp.ne.s32.totalorder %s888_s1, %s716_s30  ;;  %s29_s27 = int_to_ptr.vmem [resolvable:$true] %s28_s27 }
  0x15   :  { %p720_p9 = scmp.lt.u32.totalorder %s716_s30, %s888_s1 }
  0x17   :  { %p722_p10 = pnand %p720_p9, %p717_p8 }
  0x19   :  { %725 = shalt.err (!%p722_p10)
}
  0x1a   :  { %s726_s8 = scalar_lea.vmem %s29_s27, 4096  ;;  %p731_p12 = scmp.lt.s32.totalorder %s29_s27, %s29_s27 }
  0x1b   :  { %p727_p11 = scmp.ne.s32.totalorder %s29_s27, %s726_s8  ;;  %p732_p13 = scmp.lt.s32.totalorder %s726_s8, %s726_s8 }
  0x1d   :  { %p733_p0 = por %p732_p13, %p731_p12 }
  0x1f   :  { %p734_p1 = pnand %p733_p0, %p727_p11 }
  0x21   :  { %737 = shalt.err (!%p734_p1)
}
  0x22   :  { %s770_s0 = smov 256   ;;  %s771_s9 = smov 16  }
  0x23   :  { %34 = dma.hbm_to_vmem [thread:$0]  %s888_s1, 4096, %s29_s27, [#allocation6], %s770_s0, %s770_s0, %s771_s9  }
  0x24   :  { %760 = dma.done.wait [#allocation3], 512  }
  0x25   :  { %761 = vsyncadd [#allocation3], 4294966784 }
  0x26   :  { %762 = dma.done.wait [#allocation6], 4096  }
  0x27   :  { %763 = vsyncadd [#allocation6], 4294963200  ;;  %v772_v0 = vmov 0   ;;  %v642_v1 = vld [vmem:[#allocation5 + $0x4] ss:$16 sps:$4 sm:$0xff]   ;;  %v691_v34 = vld [vmem:[#allocation2 + $0x8] sm:$0xff]   ;;  %v86_v37 = vlaneseq }
  0x28   :  { %322 = vmatprep.mubr.bf16.mxu0 %v772_v0  ;;  %395 = vmatprep.mubr.bf16.mxu1 %v772_v0  ;;  %v644_v2 = vld [vmem:[#allocation5 + $0xc] ss:$16 sps:$4 sm:$0xff]   ;;  %v646_v3 = vld [vmem:[#allocation5] ss:$16 sps:$4 sm:$0xff]   ;;  %v647_v4 = vld [vmem:[#allocation5 + $0x8] ss:$16 sps:$4 sm:$0xff]  }
  0x29   :  { %290 = vmatprep.subr.bf16.mxu0 %v642_v1  ;;  %363 = vmatprep.subr.bf16.mxu1 %v644_v2  ;;  %v648_v5 = vld [vmem:[#allocation5 + $0x24] ss:$16 sps:$4 sm:$0xff]   ;;  %v650_v6 = vld [vmem:[#allocation5 + $0x2c] ss:$16 sps:$4 sm:$0xff]   ;;  %v652_v7 = vld [vmem:[#allocation5 + $0x20] ss:$16 sps:$4 sm:$0xff]  }
  0x2a   :  { %291 = vmatpush1.bf16.msra.mxu0 %v646_v3  ;;  %364 = vmatpush1.bf16.msra.mxu1 %v647_v4  ;;  %v653_v8 = vld [vmem:[#allocation5 + $0x28] ss:$16 sps:$4 sm:$0xff]   ;;  %v654_v9 = vld [vmem:[#allocation5 + $0x44] ss:$16 sps:$4 sm:$0xff]   ;;  %v656_v10 = vld [vmem:[#allocation5 + $0x4c] ss:$16 sps:$4 sm:$0xff]  }
  0x2b   :  { %292 = vmatprep.subr.bf16.mxu0 %v648_v5  ;;  %365 = vmatprep.subr.bf16.mxu1 %v650_v6  ;;  %v658_v11 = vld [vmem:[#allocation5 + $0x40] ss:$16 sps:$4 sm:$0xff]   ;;  %v659_v12 = vld [vmem:[#allocation5 + $0x48] ss:$16 sps:$4 sm:$0xff]   ;;  %v660_v13 = vld [vmem:[#allocation5 + $0x64] ss:$16 sps:$4 sm:$0xff]  }
  0x2c   :  { %v662_v14 = vld [vmem:[#allocation5 + $0x6c] ss:$16 sps:$4 sm:$0xff]   ;;  %v664_v15 = vld [vmem:[#allocation5 + $0x60] ss:$16 sps:$4 sm:$0xff]   ;;  %v665_v16 = vld [vmem:[#allocation5 + $0x68] ss:$16 sps:$4 sm:$0xff]  }
  0x2d   :  { %v666_v17 = vld [vmem:[#allocation5 + $0x84] ss:$16 sps:$4 sm:$0xff]   ;;  %v668_v18 = vld [vmem:[#allocation5 + $0x8c] ss:$16 sps:$4 sm:$0xff]   ;;  %v670_v19 = vld [vmem:[#allocation5 + $0x80] ss:$16 sps:$4 sm:$0xff]  }
  0x2e   :  { %293 = vmatpush1.bf16.msra.mxu0 %v652_v7  ;;  %366 = vmatpush1.bf16.msra.mxu1 %v653_v8  ;;  %v671_v20 = vld [vmem:[#allocation5 + $0x88] ss:$16 sps:$4 sm:$0xff]   ;;  %v672_v21 = vld [vmem:[#allocation5 + $0xa4] ss:$16 sps:$4 sm:$0xff]   ;;  %v674_v22 = vld [vmem:[#allocation5 + $0xac] ss:$16 sps:$4 sm:$0xff]  }
  0x2f   :  { %294 = vmatprep.subr.bf16.mxu0 %v654_v9  ;;  %367 = vmatprep.subr.bf16.mxu1 %v656_v10  ;;  %v676_v23 = vld [vmem:[#allocation5 + $0xa0] ss:$16 sps:$4 sm:$0xff]   ;;  %v677_v24 = vld [vmem:[#allocation5 + $0xa8] ss:$16 sps:$4 sm:$0xff]   ;;  %v678_v25 = vld [vmem:[#allocation5 + $0xc4] ss:$16 sps:$4 sm:$0xff]  }
  0x30   :  { %v680_v26 = vld [vmem:[#allocation5 + $0xcc] ss:$16 sps:$4 sm:$0xff]   ;;  %v682_v27 = vld [vmem:[#allocation5 + $0xc0] ss:$16 sps:$4 sm:$0xff]   ;;  %v683_v28 = vld [vmem:[#allocation5 + $0xc8] ss:$16 sps:$4 sm:$0xff]  }
  0x31   :  { %v684_v29 = vld [vmem:[#allocation5 + $0xe4] ss:$16 sps:$4 sm:$0xff]   ;;  %v686_v30 = vld [vmem:[#allocation5 + $0xec] ss:$16 sps:$4 sm:$0xff]   ;;  %v688_v31 = vld [vmem:[#allocation5 + $0xe0] ss:$16 sps:$4 sm:$0xff]  }
  0x32   :  { %295 = vmatpush1.bf16.msra.mxu0 %v658_v11  ;;  %368 = vmatpush1.bf16.msra.mxu1 %v659_v12  ;;  %v689_v32 = vld [vmem:[#allocation5 + $0xe8] ss:$16 sps:$4 sm:$0xff]   ;;  %v690_v33 = vld [vmem:[#allocation2] sm:$0xff]   ;;  %v692_v35 = vld [vmem:[#allocation2 + $0x10] sm:$0xff]   ;;  %v87_v38 = vshrl.u32 %v86_v37, 7 }
  0x33   :  { %296 = vmatprep.subr.bf16.mxu0 %v660_v13  ;;  %369 = vmatprep.subr.bf16.mxu1 %v662_v14  ;;  %v693_v36 = vld [vmem:[#allocation2 + $0x18] sm:$0xff]   ;;  %v84_v41 = vld [vmem:[%s889_s2] sm:$0xf]  ;;  %s773_s2 = smov [#allocation7]  }
  0x34   :  { %v88_v39 = vsub.s32 0, %v87_v38  ;;  %v96_v40 = vsub.s32 2, %v87_v38  ;;  %v92_v42 = vsub.s32 1, %v87_v38  ;;  %v100_v43 = vsub.s32 3, %v87_v38  ;;  %s553_s13 = sshll.u32 %s773_s2, 4  ;;  %s554_s13 = int_to_ptr.vmem [resolvable:$true] %s553_s13 }
  0x35   :  { %s738_s14 = scalar_lea.vmem %s554_s13, 2048  ;;  %p743_p3 = scmp.lt.s32.totalorder %s554_s13, %s554_s13 }
  0x36   :  { %297 = vmatpush1.bf16.msra.mxu0 %v664_v15  ;;  %370 = vmatpush1.bf16.msra.mxu1 %v665_v16  ;;  %v832_v44 = vrot.slane %v84_v41, %v88_v39  ;;  %v834_v45 = vrot.slane %v84_v41, %v96_v40  ;;  %v836_v46 = vrot.slane %v84_v41, %v92_v42  ;;  %p739_p2 = scmp.ne.s32.totalorder %s554_s13, %s738_s14  ;;  %p744_p4 = scmp.lt.s32.totalorder %s738_s14, %s738_s14 }
  0x37   :  { %298 = vmatprep.subr.bf16.mxu0 %v666_v17  ;;  %371 = vmatprep.subr.bf16.mxu1 %v668_v18  ;;  %v838_v47 = vrot.slane %v84_v41, %v100_v43 }
  0x38   :  { %p745_p5 = por %p744_p4, %p743_p3 }
  0x3a   :  { %299 = vmatpush1.bf16.msra.mxu0 %v670_v19  ;;  %372 = vmatpush1.bf16.msra.mxu1 %v671_v20  ;;  %p746_p6 = pnand %p745_p5, %p739_p2 }
  0x3b   :  { %300 = vmatprep.subr.bf16.mxu0 %v672_v21  ;;  %373 = vmatprep.subr.bf16.mxu1 %v674_v22 }
  0x3e   :  { %301 = vmatpush1.bf16.msra.mxu0 %v676_v23  ;;  %374 = vmatpush1.bf16.msra.mxu1 %v677_v24 }
  0x3f   :  { %302 = vmatprep.subr.bf16.mxu0 %v678_v25  ;;  %375 = vmatprep.subr.bf16.mxu1 %v680_v26 }
  0x42   :  { %303 = vmatpush1.bf16.msra.mxu0 %v682_v27  ;;  %376 = vmatpush1.bf16.msra.mxu1 %v683_v28 }
  0x43   :  { %304 = vmatprep.subr.bf16.mxu0 %v684_v29  ;;  %377 = vmatprep.subr.bf16.mxu1 %v686_v30 }
  0x46   :  { %305 = vmatpush1.bf16.msra.mxu0 %v688_v31  ;;  %378 = vmatpush1.bf16.msra.mxu1 %v689_v32 }
  0x49   :  { %323 = vmatmul.mubr.bf16.vlgmr.msra.gmra.mrb[0].mxu0 %v690_v33  ;;  %396 = vmatmul.mubr.bf16.vlgmr.msra.gmra.mrb[0].mxu1 %v690_v33 }
  0x4a   :  { %332 = vmatprep.mubr.bf16.mxu0 %v772_v0  ;;  %405 = vmatprep.mubr.bf16.mxu1 %v772_v0 }
  0x51   :  { %333 = vmatmul.mubr.bf16.gmra.mrb[4].mxu0 %v691_v34  ;;  %406 = vmatmul.mubr.bf16.gmra.mrb[4].mxu1 %v691_v34 }
  0x52   :  { %342 = vmatprep.mubr.bf16.mxu0 %v772_v0  ;;  %415 = vmatprep.mubr.bf16.mxu1 %v772_v0 }
  0x59   :  { %343 = vmatmul.mubr.bf16.gmra.mrb[8].mxu0 %v692_v35  ;;  %416 = vmatmul.mubr.bf16.gmra.mrb[8].mxu1 %v692_v35 }
  0x5a   :  { %352 = vmatprep.mubr.bf16.mxu0 %v772_v0  ;;  %425 = vmatprep.mubr.bf16.mxu1 %v772_v0 }
  0x61   :  { %353 = vmatmul.mubr.bf16.gmra.mrb[12].mxu0 %v693_v36  ;;  %426 = vmatmul.mubr.bf16.gmra.mrb[12].mxu1 %v693_v36 }
 0x11c   :  { %v324_v48 = vpop.f32.mrb[0].mxu0  ;;  %v397_v49 = vpop.f32.mrb[0].mxu1 }
 0x11d   :  { %v325_v50 = vadd.f32 %v324_v48, %v832_v44  ;;  %v398_v51 = vadd.f32 %v397_v49, %v834_v45  ;;  %v326_v52 = vpop.f32.mrb[1].mxu0  ;;  %v399_v53 = vpop.f32.mrb[1].mxu1 }
 0x11e   :  { %v327_v54 = vadd.f32 %v326_v52, %v836_v46  ;;  %v400_v55 = vadd.f32 %v399_v53, %v838_v47  ;;  %v328_v56 = vpop.f32.mrb[2].mxu0  ;;  %v401_v57 = vpop.f32.mrb[2].mxu1 }
 0x11f   :  { %v329_v58 = vadd.f32 %v328_v56, %v832_v44  ;;  %v402_v59 = vadd.f32 %v401_v57, %v834_v45  ;;  %v330_v60 = vpop.f32.mrb[3].mxu0  ;;  %v403_v61 = vpop.f32.mrb[3].mxu1 }
 0x120   :  { %v618_v62 = vpack.c.bf16 %v327_v54, %v325_v50  ;;  %v619_v63 = vpack.c.bf16 %v400_v55, %v398_v51  ;;  %v331_v0 = vadd.f32 %v330_v60, %v836_v46  ;;  %v404_v1 = vadd.f32 %v403_v61, %v838_v47 }
 0x122   :  { %532 = vst [vmem:[#allocation7] sm:$0xff] %v618_v62  ;;  %533 = vst [vmem:[#allocation7 + $0x8] sm:$0xff] %v619_v63  ;;  %v620_v2 = vpack.c.bf16 %v331_v0, %v329_v58  ;;  %v621_v3 = vpack.c.bf16 %v404_v1, %v402_v59 }
 0x124   :  { %534 = vst [vmem:[#allocation7 + $0x10] sm:$0xff] %v620_v2  ;;  %535 = vst [vmem:[#allocation7 + $0x18] sm:$0xff] %v621_v3  ;;  %v334_v4 = vpop.f32.mrb[4].mxu0  ;;  %v407_v5 = vpop.f32.mrb[4].mxu1 }
 0x125   :  { %v335_v6 = vadd.f32 %v334_v4, %v832_v44  ;;  %v408_v7 = vadd.f32 %v407_v5, %v834_v45  ;;  %v336_v8 = vpop.f32.mrb[5].mxu0  ;;  %v409_v9 = vpop.f32.mrb[5].mxu1 }
 0x126   :  { %v337_v10 = vadd.f32 %v336_v8, %v836_v46  ;;  %v410_v11 = vadd.f32 %v409_v9, %v838_v47  ;;  %v338_v12 = vpop.f32.mrb[6].mxu0  ;;  %v411_v13 = vpop.f32.mrb[6].mxu1 }
 0x127   :  { %v339_v14 = vadd.f32 %v338_v12, %v832_v44  ;;  %v412_v15 = vadd.f32 %v411_v13, %v834_v45  ;;  %v340_v16 = vpop.f32.mrb[7].mxu0  ;;  %v413_v17 = vpop.f32.mrb[7].mxu1 }
 0x128   :  { %v622_v18 = vpack.c.bf16 %v337_v10, %v335_v6  ;;  %v623_v19 = vpack.c.bf16 %v410_v11, %v408_v7  ;;  %v341_v20 = vadd.f32 %v340_v16, %v836_v46  ;;  %v414_v21 = vadd.f32 %v413_v17, %v838_v47 }
 0x12a   :  { %536 = vst [vmem:[#allocation7 + $0x20] sm:$0xff] %v622_v18  ;;  %537 = vst [vmem:[#allocation7 + $0x28] sm:$0xff] %v623_v19  ;;  %v624_v22 = vpack.c.bf16 %v341_v20, %v339_v14  ;;  %v625_v23 = vpack.c.bf16 %v414_v21, %v412_v15 }
 0x12c   :  { %538 = vst [vmem:[#allocation7 + $0x30] sm:$0xff] %v624_v22  ;;  %539 = vst [vmem:[#allocation7 + $0x38] sm:$0xff] %v625_v23  ;;  %v344_v24 = vpop.f32.mrb[8].mxu0  ;;  %v417_v25 = vpop.f32.mrb[8].mxu1 }
 0x12d   :  { %v345_v26 = vadd.f32 %v344_v24, %v832_v44  ;;  %v418_v27 = vadd.f32 %v417_v25, %v834_v45  ;;  %v346_v28 = vpop.f32.mrb[9].mxu0  ;;  %v419_v29 = vpop.f32.mrb[9].mxu1 }
 0x12e   :  { %v347_v30 = vadd.f32 %v346_v28, %v836_v46  ;;  %v420_v31 = vadd.f32 %v419_v29, %v838_v47  ;;  %v348_v32 = vpop.f32.mrb[10].mxu0  ;;  %v421_v33 = vpop.f32.mrb[10].mxu1 }
 0x12f   :  { %v349_v34 = vadd.f32 %v348_v32, %v832_v44  ;;  %v422_v35 = vadd.f32 %v421_v33, %v834_v45  ;;  %v350_v36 = vpop.f32.mrb[11].mxu0  ;;  %v423_v37 = vpop.f32.mrb[11].mxu1 }
 0x130   :  { %v626_v38 = vpack.c.bf16 %v347_v30, %v345_v26  ;;  %v627_v39 = vpack.c.bf16 %v420_v31, %v418_v27  ;;  %v351_v40 = vadd.f32 %v350_v36, %v836_v46  ;;  %v424_v41 = vadd.f32 %v423_v37, %v838_v47 }
 0x132   :  { %540 = vst [vmem:[#allocation7 + $0x40] sm:$0xff] %v626_v38  ;;  %541 = vst [vmem:[#allocation7 + $0x48] sm:$0xff] %v627_v39  ;;  %v628_v42 = vpack.c.bf16 %v351_v40, %v349_v34  ;;  %v629_v43 = vpack.c.bf16 %v424_v41, %v422_v35 }
 0x134   :  { %542 = vst [vmem:[#allocation7 + $0x50] sm:$0xff] %v628_v42  ;;  %543 = vst [vmem:[#allocation7 + $0x58] sm:$0xff] %v629_v43  ;;  %v354_v48 = vpop.f32.mrb[12].mxu0  ;;  %v427_v49 = vpop.f32.mrb[12].mxu1 }
 0x135   :  { %v355_v50 = vadd.f32 %v354_v48, %v832_v44  ;;  %v428_v51 = vadd.f32 %v427_v49, %v834_v45  ;;  %v356_v52 = vpop.f32.mrb[13].mxu0  ;;  %v429_v53 = vpop.f32.mrb[13].mxu1 }
 0x136   :  { %v357_v54 = vadd.f32 %v356_v52, %v836_v46  ;;  %v430_v55 = vadd.f32 %v429_v53, %v838_v47  ;;  %v358_v56 = vpop.f32.mrb[14].mxu0  ;;  %v431_v57 = vpop.f32.mrb[14].mxu1 }
 0x137   :  { %v359_v58 = vadd.f32 %v358_v56, %v832_v44  ;;  %v432_v59 = vadd.f32 %v431_v57, %v834_v45  ;;  %v360_v60 = vpop.f32.mrb[15].mxu0  ;;  %v433_v61 = vpop.f32.mrb[15].mxu1 }
 0x138   :  { %v630_v62 = vpack.c.bf16 %v357_v54, %v355_v50  ;;  %v631_v63 = vpack.c.bf16 %v430_v55, %v428_v51  ;;  %v361_v0 = vadd.f32 %v360_v60, %v836_v46  ;;  %v434_v1 = vadd.f32 %v433_v61, %v838_v47 }
 0x13a   :  { %544 = vst [vmem:[#allocation7 + $0x60] sm:$0xff] %v630_v62  ;;  %545 = vst [vmem:[#allocation7 + $0x68] sm:$0xff] %v631_v63  ;;  %v632_v2 = vpack.c.bf16 %v361_v0, %v359_v58  ;;  %v633_v3 = vpack.c.bf16 %v434_v1, %v432_v59 }
 0x13c   :  { %546 = vst [vmem:[#allocation7 + $0x70] sm:$0xff] %v632_v2  ;;  %547 = vst [vmem:[#allocation7 + $0x78] sm:$0xff] %v633_v3 }
 0x13d   :  { %749 = shalt.err (!%p746_p6)
}
 0x13e   :  { %s750_s17 = scalar_lea.hbm %s890_s3, 2048 }
 0x13f   :  { %p751_p7 = scmp.ne.s32.totalorder %s890_s3, %s750_s17  ;;  %p754_p8 = scmp.lt.u32.totalorder %s750_s17, %s890_s3 }
 0x141   :  { %p756_p9 = pnand %p754_p8, %p751_p7 }
 0x143   :  { %759 = shalt.err (!%p756_p9)
}
 0x144   :  { %559 = dma.vmem_to_hbm [thread:$0]  %s554_s13, 2048, %s890_s3, [#allocation4], %s770_s0, %s770_s0, %s771_s9  }
 0x145   :  { %764 = dma.done.wait [#allocation4], 2048  }
 0x146   :  { %765 = vsyncadd [#allocation4], 4294965248 }
 0x147   :  { %563 = vsyncpa [#allocation3], 1 }
 0x148   :  { %564 = vsyncpa [#allocation6], 1 }
 0x149   :  { %565 = vsyncpa [#allocation4], 1 }

</bundles_post_ra>
